<compile_context>
chip_gen: v5e
topology: v5e:2x2
jax: 0.10.0
libtpu: 0.0.40
codegen_flags: <defaults>
</compile_context>

<pallas_src>
import jax
import jax.numpy as jnp
from jax import lax
from jax.experimental import pallas as pl
from jax.experimental.pallas import tpu as pltpu


def _choose_depth_tile(D, sublane_mult, row_bytes, target_bytes, max_unrolled=64):
    """Pick a depth tile tD that divides D and keeps (8,128)-legal blocks."""
    candidates = [d for d in range(1, D + 1)
                  if D % d == 0 and (d == D or d % sublane_mult == 0)]
    good = [d for d in candidates
            if d * row_bytes <= target_bytes and d <= max_unrolled]
    if good:
        return max(good)
    return min(candidates)  # D itself is always a candidate.


def _largest_divisor_at_most(n, cap):
    cap = max(1, min(n, cap))
    best = 1
    for d in range(1, cap + 1):
        if n % d == 0:
            best = d
    return best


def pixel_shuffle_3d(x, upscale_factor, *, target_block_bytes=4 * 1024 * 1024):
    """Pallas implementation of PixelShuffle3D (NCDHW)."""
    B, C, D, H, W = x.shape
    r = int(upscale_factor)
    if C % r != 0:
        raise ValueError("channels must be divisible by upscale_factor")
    C_out = C // r
    D_out = D * r
    HW = H * W

    itemsize = int(jnp.dtype(x.dtype).itemsize)
    # Sub-32-bit dtypes pack along sublanes -> second-minor tiles need 16/32.
    sublane_mult = 8 * max(1, 4 // itemsize)

    # Bytes of one depth-slice of one output-channel group (r input channels).
    row_bytes = r * HW * itemsize
    tD = _choose_depth_tile(D, sublane_mult, row_bytes, target_block_bytes)
    tc = _largest_divisor_at_most(C_out, max(1, target_block_bytes // (row_bytes * tD)))

    block_bytes = tc * r * tD * HW * itemsize
    grid = (B, C_out // tc, D // tD)

    # Lane-dense view: (B, C_out, r, D, HW). Pure metadata reshape (free).
    x5 = x.reshape(B, C_out, r, D, HW)

    unrolled = tD <= 64  # static unroll only for modest depth tiles

    def kernel(x_ref, o_ref):
        # x_ref: (1, tc, r, tD, HW)   input channel groups for this tile
        # o_ref: (1, tc, tD * r, HW)  interleaved output depths
        if unrolled:
            for d in range(tD):
                o_ref[0, :, d * r:(d + 1) * r, :] = x_ref[0, :, :, d, :]
        else:
            def body(d, carry):
                o_ref[0, :, pl.ds(d * r, r), :] = x_ref[0, :, :, d, :]
                return carry
            lax.fori_loop(0, tD, body, 0)

    vmem_limit = int(min(max(32 * 1024 * 1024, 6 * block_bytes),
                         100 * 1024 * 1024))

    out = pl.pallas_call(
        kernel,
        out_shape=jax.ShapeDtypeStruct((B, C_out, D_out, HW), x.dtype),
        grid_spec=pltpu.PrefetchScalarGridSpec(
            num_scalar_prefetch=0,
            grid=grid,
            in_specs=[
                pl.BlockSpec((1, tc, r, tD, HW),
                             lambda b, c, d: (b, c, 0, d, 0)),
            ],
            out_specs=pl.BlockSpec((1, tc, tD * r, HW),
                                   lambda b, c, d: (b, c, d, 0)),
        ),
        compiler_params=pltpu.CompilerParams(
            dimension_semantics=("parallel", "parallel", "parallel"),
            vmem_limit_bytes=vmem_limit,
        ),
        cost_estimate=pl.CostEstimate(
            flops=0,
            transcendentals=0,
            bytes_accessed=2 * x.size * itemsize),
    )(x5)

    return out.reshape(B, C_out, D_out, H, W)


def pixel_shuffle_3d_ref(x, r):
    """Pure-JAX reference mirroring the PyTorch view/permute/view exactly."""
    B, C, D, H, W = x.shape
    C_out = C // r
    v = x.reshape(B, C_out, r, 1, 1, D, H, W)
    v = jnp.transpose(v, (0, 1, 5, 2, 6, 3, 7, 4))
    return v.reshape(B, C_out, D * r, H, W)


if __name__ == "__main__":
    key = jax.random.PRNGKey(0)

    # Main test: B=2, C=4, D=4, H=16, W=16, upscale_factor=2.
    r1 = 2
    x1 = jax.random.normal(key, (2, 4, 4, 16, 16), dtype=jnp.float32)
    out1 = jax.block_until_ready(pixel_shuffle_3d(x1, r1))
    ref1 = pixel_shuffle_3d_ref(x1, r1)
    assert out1.shape == (2, 2, 8, 16, 16), out1.shape
    assert out1.dtype == x1.dtype
    assert jnp.allclose(out1, ref1), "Pallas output does not match reference (r=2)"

    # Secondary test: odd-ish shape, r=3, lane dim not a multiple of 128.
    r2 = 3
    x2 = jax.random.normal(jax.random.PRNGKey(1), (1, 6, 5, 8, 24),
                           dtype=jnp.float32)
    out2 = jax.block_until_ready(pixel_shuffle_3d(x2, r2))
    ref2 = pixel_shuffle_3d_ref(x2, r2)
    assert out2.shape == (1, 2, 15, 8, 24), out2.shape
    assert jnp.allclose(out2, ref2), "Pallas output does not match reference (r=3)"

    print("KERNEL_OK")
</pallas_src>

<mosaic_0001>
module attributes {stable_mosaic.version = 11 : i64} {
  func.func @kernel(%arg0: i32, %arg1: i32, %arg2: i32, %arg3: memref<1x2x2x4x256xf32, #tpu.memory_space<vmem>>, %arg4: memref<1x2x8x256xf32, #tpu.memory_space<vmem>>) attributes {dimension_semantics = [#tpu.dimension_semantics<parallel>, #tpu.dimension_semantics<parallel>, #tpu.dimension_semantics<parallel>], iteration_bounds = array<i64: 2, 1, 1>, scalar_prefetch = 0 : i64, scratch_operands = 0 : i64, tpu.core_type = #tpu.core_type<tc>, window_params = [{transform_indices = @transform_0, window_bounds = array<i64: 1, 2, 2, 4, 256>}, {transform_indices = @transform_1, window_bounds = array<i64: 1, 2, 8, 256>}]} {
    %c0 = arith.constant 0 : index
    %c0_0 = arith.constant 0 : index
    %c0_1 = arith.constant 0 : index
    %c0_2 = arith.constant 0 : index
    %c0_3 = arith.constant 0 : index
    %0 = vector.load %arg3[%c0, %c0_0, %c0_1, %c0_2, %c0_3] : memref<1x2x2x4x256xf32, #tpu.memory_space<vmem>>, vector<1x2x2x1x256xf32>
    %1 = vector.shape_cast %0 : vector<1x2x2x1x256xf32> to vector<2x2x256xf32>
    %c0_4 = arith.constant 0 : index
    %c0_5 = arith.constant 0 : index
    %c0_6 = arith.constant 0 : index
    %c0_7 = arith.constant 0 : index
    %2 = vector.load %arg4[%c0_4, %c0_5, %c0_6, %c0_7] : memref<1x2x8x256xf32, #tpu.memory_space<vmem>>, vector<1x2x2x256xf32>
    %3 = vector.shape_cast %2 : vector<1x2x2x256xf32> to vector<2x2x256xf32>
    %4 = vector.shape_cast %1 : vector<2x2x256xf32> to vector<1x2x2x256xf32>
    tpu.vector_store %arg4[%c0_4, %c0_5, %c0_6, %c0_7], %4 {strides = array<i32>} : memref<1x2x8x256xf32, #tpu.memory_space<vmem>>, vector<1x2x2x256xf32>,
    %c0_8 = arith.constant 0 : index
    %c0_9 = arith.constant 0 : index
    %c0_10 = arith.constant 0 : index
    %c1 = arith.constant 1 : index
    %c0_11 = arith.constant 0 : index
    %5 = vector.load %arg3[%c0_8, %c0_9, %c0_10, %c1, %c0_11] : memref<1x2x2x4x256xf32, #tpu.memory_space<vmem>>, vector<1x2x2x1x256xf32>
    %6 = vector.shape_cast %5 : vector<1x2x2x1x256xf32> to vector<2x2x256xf32>
    %c0_12 = arith.constant 0 : index
    %c0_13 = arith.constant 0 : index
    %c2 = arith.constant 2 : index
    %c0_14 = arith.constant 0 : index
    %7 = vector.load %arg4[%c0_12, %c0_13, %c2, %c0_14] : memref<1x2x8x256xf32, #tpu.memory_space<vmem>>, vector<1x2x2x256xf32>
    %8 = vector.shape_cast %7 : vector<1x2x2x256xf32> to vector<2x2x256xf32>
    %9 = vector.shape_cast %6 : vector<2x2x256xf32> to vector<1x2x2x256xf32>
    tpu.vector_store %arg4[%c0_12, %c0_13, %c2, %c0_14], %9 {strides = array<i32>} : memref<1x2x8x256xf32, #tpu.memory_space<vmem>>, vector<1x2x2x256xf32>,
    %c0_15 = arith.constant 0 : index
    %c0_16 = arith.constant 0 : index
    %c0_17 = arith.constant 0 : index
    %c2_18 = arith.constant 2 : index
    %c0_19 = arith.constant 0 : index
    %10 = vector.load %arg3[%c0_15, %c0_16, %c0_17, %c2_18, %c0_19] : memref<1x2x2x4x256xf32, #tpu.memory_space<vmem>>, vector<1x2x2x1x256xf32>
    %11 = vector.shape_cast %10 : vector<1x2x2x1x256xf32> to vector<2x2x256xf32>
    %c0_20 = arith.constant 0 : index
    %c0_21 = arith.constant 0 : index
    %c4 = arith.constant 4 : index
    %c0_22 = arith.constant 0 : index
    %12 = vector.load %arg4[%c0_20, %c0_21, %c4, %c0_22] : memref<1x2x8x256xf32, #tpu.memory_space<vmem>>, vector<1x2x2x256xf32>
    %13 = vector.shape_cast %12 : vector<1x2x2x256xf32> to vector<2x2x256xf32>
    %14 = vector.shape_cast %11 : vector<2x2x256xf32> to vector<1x2x2x256xf32>
    tpu.vector_store %arg4[%c0_20, %c0_21, %c4, %c0_22], %14 {strides = array<i32>} : memref<1x2x8x256xf32, #tpu.memory_space<vmem>>, vector<1x2x2x256xf32>,
    %c0_23 = arith.constant 0 : index
    %c0_24 = arith.constant 0 : index
    %c0_25 = arith.constant 0 : index
    %c3 = arith.constant 3 : index
    %c0_26 = arith.constant 0 : index
    %15 = vector.load %arg3[%c0_23, %c0_24, %c0_25, %c3, %c0_26] : memref<1x2x2x4x256xf32, #tpu.memory_space<vmem>>, vector<1x2x2x1x256xf32>
    %16 = vector.shape_cast %15 : vector<1x2x2x1x256xf32> to vector<2x2x256xf32>
    %c0_27 = arith.constant 0 : index
    %c0_28 = arith.constant 0 : index
    %c6 = arith.constant 6 : index
    %c0_29 = arith.constant 0 : index
    %17 = vector.load %arg4[%c0_27, %c0_28, %c6, %c0_29] : memref<1x2x8x256xf32, #tpu.memory_space<vmem>>, vector<1x2x2x256xf32>
    %18 = vector.shape_cast %17 : vector<1x2x2x256xf32> to vector<2x2x256xf32>
    %19 = vector.shape_cast %16 : vector<2x2x256xf32> to vector<1x2x2x256xf32>
    tpu.vector_store %arg4[%c0_27, %c0_28, %c6, %c0_29], %19 {strides = array<i32>} : memref<1x2x8x256xf32, #tpu.memory_space<vmem>>, vector<1x2x2x256xf32>,
    return
  }
  func.func @transform_0(%arg0: i32, %arg1: i32, %arg2: i32) -> (i32, i32, i32, i32, i32) {
    %c0_i32 = arith.constant 0 : i32
    %c0_i32_0 = arith.constant 0 : i32
    %c0_i32_1 = arith.constant 0 : i32
    return %arg0, %arg1, %c0_i32, %arg2, %c0_i32_0 : i32, i32, i32, i32, i32
  }
  func.func @transform_1(%arg0: i32, %arg1: i32, %arg2: i32) -> (i32, i32, i32, i32) {
    %c0_i32 = arith.constant 0 : i32
    %c0_i32_0 = arith.constant 0 : i32
    return %arg0, %arg1, %arg2, %c0_i32 : i32, i32, i32, i32
  }
}

</mosaic_0001>

<bundles_post_ra>
// kernel: tpu_custom_call.1
= control target key start
LH: loop header
LB: loop body
LE: loop exit
PB: predicated region body
PF: predicated region fallthrough
CT: control target
= control target key end

     0   :  { %6 = vsyncpa [#allocation3], 0  ;;  %s787_s0 = inlined_call_operand.hbm [shape: f32[2,2,2,4,256], index: 0, kind: input, shape index: {}]   ;;  %s788_s1 = inlined_call_operand.hbm [shape: f32[2,2,8,256], index: 1, kind: output, shape index: {}]  }
   0x1   :  { %8 = vsyncpa [#allocation3 + $0x1], 0 }
   0x2   :  { %9 = vsyncpa [#allocation4], 0 }
   0x3   :  { %11 = vsyncpa [#allocation4 + $0x1], 0  ;;  %s630_s6 = smov 0   ;;  %s632_s7 = smov 0  }
   0x4   :  { %s634_s8 = smov 0   ;;  %s636_s9 = smov 0  }
   0x5   :  { %s638_s10 = smov 0   ;;  %s640_s11 = smov 0  }
   0x6 LB: > { %s404_s12 = sadd.s32 4294967295, %s614_s11   ;;  %s405_s13 = sadd.s32 4294967294, %s614_s11   ;;  %s614_s11 = sphi %s640_s11, %s17_s11   ;;  %s610_s10 = sphi %s638_s10, %s797_s10   ;;  %s606_s9 = sphi %s636_s9, %s796_s9   ;;  %s602_s8 = sphi %s634_s8, %s795_s8   ;;  %s598_s7 = sphi %s632_s7, %s794_s7   ;;  %s594_s6 = sphi %s630_s6, %s793_s6  }
   0x7   : > { %s36_s14 = sadd.s32 1, %s610_s10  ;;  %s47_s15 = sadd.s32 1, %s602_s8 }
   0x8   : > { %p38_p0 = scmp.ge.s32.totalorder %s36_s14, 2  ;;  %p54_p1 = scmp.ne.s32.totalorder %s602_s8, %s598_s7 }
   0x9   : > { %p55_p2 = scmp.eq.s32.totalorder %s614_s11, 0  ;;  %p60_p3 = scmp.ne.s32.totalorder %s598_s7, %s594_s6 }
   0xa   : > { %s799_s14 = smov (%p38_p0, %s36_s14), 0  ;;  %p61_p5 = scmp.eq.s32.totalorder %s404_s12, 0 }
   0xb   : > { %p671_p4 = por %p55_p2, %p54_p1  ;;  %s40_s17 = ssub.s32 %s610_s10, %s799_s14 }
   0xc   : > { %p88_p6 = scmp.eq.s32.totalorder %s404_s12, 1  ;;  %p45_p7 = scmp.eq.s32.totalorder %s40_s17, 0 }
   0xd   : > { %p677_p8 = por %p61_p5, %p60_p3  ;;  %p94_p10 = scmp.eq.s32.totalorder %s405_s13, 1 }
   0xe   : > { %p681_p9 = por %p88_p6, %p54_p1  ;;  %p407_p12 = scmp.ge.s32.totalorder %s614_s11, 2 }
   0xf   : > { %s686_s20 = scalar_select %p45_p7, %s602_s8, %s47_s15  }
  0x10   : > { %p688_p11 = por %p94_p10, %p60_p3  ;;  %p448_p13 = scmp.lt.s32.totalorder %s614_s11, 2 }
  0x11   : > { %s114_s22 = sand.u32 1, %s602_s8   ;;  %s434_s24 = sshll.u32 %s610_s10, 5 }
  0x12   : > { %s408_s23 = sshll.u32 %s114_s22, 5  ;;  %s128_s27 = scalar_lea.hbm %s787_s0, %s434_s24 }
  0x13   : > { %s118_s28 = scalar_lea.vmem [#allocation2], %s408_s23  ;;  %s129_s30 = sshll.u32 %s128_s27, 4  ;;  %s130_s30 = int_to_ptr.hbm [resolvable:$true] %s129_s30 }
  0x14   : > { %s131_s29 = sshll.u32 %s118_s28, 4  ;;  %p441_p0 = pnand %p448_p13, %p671_p4  ;;  %s132_s29 = int_to_ptr.vmem [resolvable:$true] %s131_s29 }
  0x15   : > { %p411_p1 = scmp.ge.s32.totalorder %s614_s11, 1  ;;  %s115_s2 = scalar_lea.sflag [#allocation3], %s114_s22 }
  0x16   : > { %s616_s3 = smov 128   ;;  %s617_s4 = smov 8  }
  0x17   : > { %443 = dma.hbm_to_vmem [thread:$0]  (!%p441_p0), %s130_s30, 512, %s132_s29, %s115_s2, %s616_s3, %s616_s3, %s617_s4  }
  0x18   : > { %p139_p2 = scmp.lt.s32.totalorder %s614_s11, 3 }
  0x1a   : > { %p140_p3 = pnand %p411_p1, %p139_p2 }
  0x1b   : > { %s704_s5 = sand.u32 (!%p140_p3), 1, %s598_s7  }
  0x1c   : > { %143 = sbr.rel (%p140_p3) target bundleno = 124 (0x7c), region = 24  ;;  %s412_s12 = sshll.u32 (!%p140_p3), %s704_s5, 5 }
  0x1d   : > { %s146_s13 = scalar_lea.sflag (!%p140_p3), [#allocation3], %s704_s5  ;;  %s708_s15 = scalar_lea.vmem (!%p140_p3), [#allocation2], %s412_s12 }
  0x21   : > { %585 = dma.done.wait (%p677_p8), %s146_s13, 512  }
  0x22   : > { %587 = vsyncadd (%p677_p8), %s146_s13, 4294966784  ;;  %v171_v0 = vld [vmem:[%s708_s15] ss:$4 sm:$0x3]  ;;  %s718_s16 = scalar_lea.vmem [#allocation5], %s412_s12  ;;  %s435_s17 = sshll.u32 %s606_s9, 5 }
  0x23   : > { %v414_v1 = vld [vmem:[%s708_s15 + $0x8] ss:$4 sm:$0x3]  ;;  %182 = vst [vmem:[#allocation1] ss:$9 sm:$0xff] %v171_v0  ;;  %s306_s23 = scalar_lea.hbm %s788_s1, %s435_s17  ;;  %s307_s24 = sshll.u32 %s718_s16, 4  ;;  %s308_s24 = int_to_ptr.vmem [resolvable:$true] %s307_s24 }
  0x24   : > { %184 = vst [vmem:[#allocation1 + $0x1] ss:$9 sm:$0xff] %v414_v1  ;;  %v415_v2 = vld [vmem:[%s708_s15 + $0x10] ss:$4 sm:$0x3]  ;;  %s309_s25 = sshll.u32 %s306_s23, 4  ;;  %s310_s25 = int_to_ptr.hbm [resolvable:$true] %s309_s25 }
  0x25   : > { %v416_v3 = vld [vmem:[%s708_s15 + $0x18] ss:$4 sm:$0x3]  ;;  %v417_v8 = vld [vmem:[%s708_s15 + $0x1] ss:$4 sm:$0x3] }
  0x26   : > { %v418_v9 = vld [vmem:[%s708_s15 + $0x9] ss:$4 sm:$0x3]  ;;  %v419_v10 = vld [vmem:[%s708_s15 + $0x11] ss:$4 sm:$0x3] }
  0x27   : > { %v420_v13 = vld [vmem:[%s708_s15 + $0x19] ss:$4 sm:$0x3]  ;;  %v421_v16 = vld [vmem:[%s708_s15 + $0x2] ss:$4 sm:$0x3] }
  0x28   : > { %v422_v17 = vld [vmem:[%s708_s15 + $0xa] ss:$4 sm:$0x3]  ;;  %v423_v20 = vld [vmem:[%s708_s15 + $0x12] ss:$4 sm:$0x3] }
  0x29   : > { %v424_v21 = vld [vmem:[%s708_s15 + $0x1a] ss:$4 sm:$0x3]  ;;  %v425_v24 = vld [vmem:[%s708_s15 + $0x3] ss:$4 sm:$0x3] }
  0x2a   : > { %v426_v25 = vld [vmem:[%s708_s15 + $0xb] ss:$4 sm:$0x3]  ;;  %v427_v28 = vld [vmem:[%s708_s15 + $0x13] ss:$4 sm:$0x3] }
  0x2b   : > { %v185_v4 = vld [vmem:[#allocation1] sm:$0xff]  ;;  %v186_v5 = vld [vmem:[#allocation1 + $0x9] sm:$0xff]  ;;  %s290_s26 = scalar_lea.sflag [#allocation4], %s704_s5  ;;  %s546_s27 = sshra.s32 %s310_s25, 4  ;;  %s547_s27 = int_to_ptr.hbm [resolvable:$true] %s546_s27 }
  0x2c   : > { %187 = vst [vmem:[#allocation1] ss:$9 sm:$0xff] %v415_v2  ;;  %v428_v29 = vld [vmem:[%s708_s15 + $0x1b] ss:$4 sm:$0x3]  ;;  %s548_s28 = scalar_lea.hbm %s547_s27, 32  ;;  %p553_p7 = scmp.lt.s32.totalorder %s547_s27, %s788_s1 }
  0x2d   : > { %188 = vst [vmem:[#allocation1 + $0x1] ss:$9 sm:$0xff] %v416_v3  ;;  %p549_p4 = scmp.ne.s32.totalorder %s547_s27, %s548_s28  ;;  %s552_s30 = scalar_lea.hbm %s788_s1, 64 }
  0x2e   : > { %195 = vst [vmem:[%s718_s16] sm:$0x3] %v185_v4  ;;  %p554_p8 = scmp.lt.s32.totalorder %s552_s30, %s548_s28 }
  0x2f   : > { %196 = vst [vmem:[%s718_s16 + $0x8] sm:$0x3] %v186_v5  ;;  %p550_p5 = pnand %p549_p4, %p681_p9 }
  0x30   : > { %p555_p10 = por %p554_p8, %p553_p7 }
  0x31   : > { %p551_p6 = pneg %p550_p5 }
  0x33   : > { %p556_p13 = pnand %p555_p10, %p551_p6 }
  0x34   : > { %v189_v6 = vld [vmem:[#allocation1] sm:$0xff]  ;;  %v190_v7 = vld [vmem:[#allocation1 + $0x9] sm:$0xff] }
  0x35   : > { %197 = vst [vmem:[%s718_s16 + $0x10] sm:$0x3] %v189_v6 }
  0x36   : > { %198 = vst [vmem:[%s718_s16 + $0x18] sm:$0x3] %v190_v7 }
  0x37   : > { %212 = vst [vmem:[#allocation1 + $0x2] ss:$9 sm:$0xff] %v417_v8 }
  0x38   : > { %214 = vst [vmem:[#allocation1 + $0x3] ss:$9 sm:$0xff] %v418_v9 }
  0x3f   : > { %v215_v11 = vld [vmem:[#allocation1] sm:$0xff]  ;;  %v216_v12 = vld [vmem:[#allocation1 + $0x9] sm:$0xff] }
  0x40   : > { %217 = vst [vmem:[#allocation1 + $0x2] ss:$9 sm:$0xff] %v419_v10 }
  0x41   : > { %225 = vst [vmem:[%s718_s16] sm:$0xc] %v215_v11 }
  0x42   : > { %226 = vst [vmem:[%s718_s16 + $0x8] sm:$0xc] %v216_v12 }
  0x43   : > { %218 = vst [vmem:[#allocation1 + $0x3] ss:$9 sm:$0xff] %v420_v13 }
  0x4a   : > { %v219_v14 = vld [vmem:[#allocation1] sm:$0xff]  ;;  %v220_v15 = vld [vmem:[#allocation1 + $0x9] sm:$0xff] }
  0x4b   : > { %227 = vst [vmem:[%s718_s16 + $0x10] sm:$0xc] %v219_v14 }
  0x4c   : > { %228 = vst [vmem:[%s718_s16 + $0x18] sm:$0xc] %v220_v15 }
  0x4d   : > { %242 = vst [vmem:[#allocation1 + $0x4] ss:$9 sm:$0xff] %v421_v16 }
  0x4e   : > { %244 = vst [vmem:[#allocation1 + $0x5] ss:$9 sm:$0xff] %v422_v17 }
  0x55   : > { %v245_v18 = vld [vmem:[#allocation1] sm:$0xff]  ;;  %v246_v19 = vld [vmem:[#allocation1 + $0x9] sm:$0xff] }
  0x56   : > { %255 = vst [vmem:[%s718_s16] sm:$0x30] %v245_v18 }
  0x57   : > { %256 = vst [vmem:[%s718_s16 + $0x8] sm:$0x30] %v246_v19 }
  0x58   : > { %247 = vst [vmem:[#allocation1 + $0x4] ss:$9 sm:$0xff] %v423_v20 }
  0x59   : > { %248 = vst [vmem:[#allocation1 + $0x5] ss:$9 sm:$0xff] %v424_v21 }
  0x60   : > { %v249_v22 = vld [vmem:[#allocation1] sm:$0xff]  ;;  %v250_v23 = vld [vmem:[#allocation1 + $0x9] sm:$0xff] }
  0x61   : > { %257 = vst [vmem:[%s718_s16 + $0x10] sm:$0x30] %v249_v22 }
  0x62   : > { %258 = vst [vmem:[%s718_s16 + $0x18] sm:$0x30] %v250_v23 }
  0x63   : > { %272 = vst [vmem:[#allocation1 + $0x6] ss:$9 sm:$0xff] %v425_v24 }
  0x64   : > { %274 = vst [vmem:[#allocation1 + $0x7] ss:$9 sm:$0xff] %v426_v25 }
  0x6b   : > { %v275_v26 = vld [vmem:[#allocation1] sm:$0xff]  ;;  %v276_v27 = vld [vmem:[#allocation1 + $0x9] sm:$0xff] }
  0x6c   : > { %285 = vst [vmem:[%s718_s16] sm:$0xc0] %v275_v26 }
  0x6d   : > { %286 = vst [vmem:[%s718_s16 + $0x8] sm:$0xc0] %v276_v27 }
  0x6e   : > { %277 = vst [vmem:[#allocation1 + $0x6] ss:$9 sm:$0xff] %v427_v28 }
  0x6f   : > { %278 = vst [vmem:[#allocation1 + $0x7] ss:$9 sm:$0xff] %v428_v29 }
  0x76   : > { %v279_v30 = vld [vmem:[#allocation1] sm:$0xff]  ;;  %v280_v31 = vld [vmem:[#allocation1 + $0x9] sm:$0xff] }
  0x77   : > { %287 = vst [vmem:[%s718_s16 + $0x10] sm:$0xc0] %v279_v30 }
  0x78   : > { %288 = vst [vmem:[%s718_s16 + $0x18] sm:$0xc0] %v280_v31 }
  0x79   : > { %559 = shalt.err (!%p556_p13)
}
  0x7a   : > { %s618_s4 = smov 256   ;;  %s619_s5 = smov 16  }
  0x7b   : > { %438 = dma.vmem_to_hbm [thread:$0]  (%p681_p9), %s308_s24, 512, %s310_s25, %s290_s26, %s618_s4, %s618_s4, %s619_s5  }
  0x7c PF: > { %s324_s12 = sand.u32 1, %s594_s6   ;;  %p445_p0 = pnand %p407_p12, %p688_p11 }
  0x7d   : > { %s325_s13 = scalar_lea.sflag [#allocation4], %s324_s12 }
  0x7e   : > { %p446_p1 = pneg %p445_p0 }
  0x80   : > { %589 = dma.done.wait (%p446_p1), %s325_s13, 512  }
  0x81   : > { %591 = vsyncadd (%p446_p1), %s325_s13, 4294966784  ;;  %s17_s11 = sadd.s32 1, %s614_s11   ;;  %s793_s6 = smov %s598_s7 }
  0x82   : > { %p14_p2 = scmp.ge.s32.totalorder %s17_s11, 4   ;;  %s794_s7 = smov %s602_s8 }
  0x83   : > { %s795_s8 = smov %s686_s20  ;;  %s796_s9 = smov %s610_s10 }
  0x84   : > { %s797_s10 = smov %s799_s14  ;;  %16 = sbr.rel (!%p14_p2) target bundleno = 6 (0x6), region = 91 }
  0x89   :  { %331 = vsyncpa [#allocation3], 1 }
  0x8a   :  { %333 = vsyncpa [#allocation3 + $0x1], 1 }
  0x8b   :  { %334 = vsyncpa [#allocation4], 1 }
  0x8c   :  { %336 = vsyncpa [#allocation4 + $0x1], 1 }

</bundles_post_ra>
